<compile_context>
chip_gen: v6e
topology: v6e:2x2x1
jax: 0.10.0
libtpu: 0.0.40
codegen_flags: <defaults>
</compile_context>

<pallas_src>
import jax
import jax.numpy as jnp
from jax.experimental import pallas as pl
from jax.experimental.pallas import tpu as pltpu


# --------------------------------------------------------------------------- #
# Kernel: out_tile = relu(W_blockdiag @ x_tile)                                #
# --------------------------------------------------------------------------- #
def _gcn_channel_kernel(w_ref, x_ref, o_ref):
    # w_ref: (rows, rows)  block-diagonal per-group weight (compute dtype)
    # x_ref: (rows, tn)    input tile (compute dtype)
    # o_ref: (rows, tn)    output tile (x.dtype)
    out = jnp.dot(w_ref[...], x_ref[...], preferred_element_type=jnp.float32)
    o_ref[...] = jnp.maximum(out, 0.0).astype(o_ref.dtype)


# --------------------------------------------------------------------------- #
# Plain-JAX prologue                                                           #
# --------------------------------------------------------------------------- #
def _channel_weight(x, adj):
    """Per-batch (C, C) weight: adj * sym(||sigmoid(mean_s - mean_r)| - 0.5| * 2)."""
    b, c, h, w = x.shape
    # AdaptiveAvgPool2d(1): mean over H*W with f32 accumulation (no f32 copy of x).
    c_mean = jnp.mean(x.reshape(b, c, h * w), axis=2, dtype=jnp.float32)  # (B, C)
    diff = c_mean[:, None, :] - c_mean[:, :, None]                        # t1 - t2
    a = jnp.abs(jnp.abs(jax.nn.sigmoid(diff) - 0.5) - 0.5) * 2.0
    a = (jnp.swapaxes(a, 1, 2) + a) * 0.5                                 # symmetrize (cheap)
    return adj.astype(jnp.float32)[None] * a                              # (B, C, C) f32


def _block_diag(weight, block_b):
    """(B, C, C) -> (B // block_b, block_b*C, block_b*C) block-diagonal."""
    b, c, _ = weight.shape
    g = b // block_b
    wg = weight.reshape(g, block_b, c, c)
    eye = jnp.eye(block_b, dtype=weight.dtype)
    wbd = wg[:, :, :, None, :] * eye[None, :, None, :, None]   # (g, k, i, l, j)
    return wbd.reshape(g, block_b * c, block_b * c)


def _vmem_capacity_bytes():
    try:
        return int(pltpu.get_tpu_info().vmem_capacity_bytes)
    except Exception:
        return 64 << 20  # most conservative (v7x per-TC)


def _pick_block_b(b, c, target_rows):
    """Largest divisor of b with block_b * c <= target_rows (>= 1)."""
    best = 1
    for cand in range(1, b + 1):
        if b % cand == 0 and cand * c <= target_rows:
            best = cand
    return best


def _pick_tn(hw128, rows, itemsize, budget_bytes):
    """Largest multiple of 128 that divides hw128 and keeps the x tile under budget."""
    m = hw128 // 128
    best = 128
    for d in range(1, m + 1):
        if m % d == 0 and 128 * d * rows * itemsize <= budget_bytes:
            best = 128 * d
    return best


# --------------------------------------------------------------------------- #
# Wrapper                                                                      #
# --------------------------------------------------------------------------- #
def gcn_channel_forward(x, adj=None):
    """Forward of GCN_channel.  x: (B, C, H, W); adj defaults to ones((C, C))."""
    b, c, h, w = x.shape
    hw = h * w

    orig_dtype = x.dtype
    if x.dtype not in (jnp.float32, jnp.bfloat16):
        x = x.astype(jnp.float32)
    compute_dtype = x.dtype          # native HBM dtype: f32 stays f32, bf16 stays bf16
    itemsize = jnp.dtype(compute_dtype).itemsize

    if adj is None:
        adj = jnp.ones((c, c), dtype=jnp.float32)

    # ---- prologue: per-batch (C, C) weight (needs the full H*W reduction) ----
    weight = _channel_weight(x, adj)                        # (B, C, C) f32

    # ---- batch grouping: block-diagonal rows sized toward the MXU tile ----
    vmem_cap = _vmem_capacity_bytes()
    target_rows = 256                                        # dense on v6e/v7x; v5e splits it for free
    block_b = _pick_block_b(b, c, target_rows)

    # ---- lane tiling: multiples of 128 dividing hw128 (pad waste < 128 lanes) ----
    hw128 = pl.cdiv(hw, 128) * 128
    x_tile_budget = (4 << 20) if vmem_cap >= (96 << 20) else (2 << 20)
    tn = _pick_tn(hw128, block_b * c, itemsize, x_tile_budget)
    n_j = hw128 // tn
    g = b // block_b

    # v7x megacore: keep >= 2 grid steps on some axis when the problem allows it.
    if g == 1 and n_j == 1 and b >= 2:
        block_b = max(d for d in range(1, b // 2 + 1) if b % d == 0)
        g = b // block_b

    rows = block_b * c
    # NOTE: the (rows, rows) weight block must fit VMEM; fine for typical channel counts.
    w_bd = _block_diag(weight, block_b).astype(compute_dtype)   # (G, rows, rows), pre-cast once

    x_flat = x.reshape(b, c, hw)
    if hw128 != hw:
        # One bounded pad pass (<128 trailing lanes) keeps all stores lane-dense.
        x_flat = jnp.pad(x_flat, ((0, 0), (0, 0), (0, hw128 - hw)))
    x_grp = x_flat.reshape(g, rows, hw128)

    # ---- VMEM sizing: double-buffered weight / in / out + f32 matmul result ----
    w_bytes = rows * rows * itemsize
    x_bytes = rows * tn * itemsize
    vmem_need = 2 * w_bytes + 4 * x_bytes + rows * tn * 4
    vmem_limit = max(2 * vmem_need, 16 << 20)
    vmem_limit = int(min(vmem_limit, max(vmem_cap // 2, vmem_need + (2 << 20))))

    cost = pl.CostEstimate(
        flops=2 * b * c * c * hw128,
        transcendentals=0,                                   # sigmoid hoisted out
        bytes_accessed=2 * b * c * hw128 * itemsize + g * rows * rows * itemsize,
    )

    out_grp = pl.pallas_call(
        _gcn_channel_kernel,
        out_shape=jax.ShapeDtypeStruct((g, rows, hw128), compute_dtype),
        grid_spec=pltpu.PrefetchScalarGridSpec(
            num_scalar_prefetch=0,
            grid=(g, n_j),
            in_specs=[
                pl.BlockSpec((None, rows, rows), lambda i, j: (i, 0, 0)),
                pl.BlockSpec((None, rows, tn), lambda i, j: (i, 0, j)),
            ],
            out_specs=pl.BlockSpec((None, rows, tn), lambda i, j: (i, 0, j)),
        ),
        compiler_params=pltpu.CompilerParams(
            dimension_semantics=("parallel", "parallel"),
            vmem_limit_bytes=vmem_limit,
        ),
        cost_estimate=cost,
    )(w_bd, x_grp)

    out = out_grp.reshape(b, c, hw128)
    if hw128 != hw:
        out = out[:, :, :hw]
    out = out.reshape(b, c, h, w)
    if out.dtype != orig_dtype:
        out = out.astype(orig_dtype)
    return out


# --------------------------------------------------------------------------- #
# Pure-JAX reference mirroring the PyTorch module exactly.                     #
# --------------------------------------------------------------------------- #
def _reference_forward(x, adj, para):
    b, c, h, w = x.shape
    fea = x.reshape(b, c, h * w).astype(jnp.float32)
    c_adj = jnp.mean(fea, axis=2)                            # (B, C)
    t1 = c_adj[:, None, :]                                   # (B, 1, C)
    t2 = c_adj[:, :, None]                                   # (B, C, 1)
    a = jnp.abs(jnp.abs(jax.nn.sigmoid(t1 - t2) - 0.5) - 0.5) * 2.0
    sym = (jnp.swapaxes(a, 1, 2) + a) * 0.5                  # (B, C, C)
    out = jnp.einsum("bij,bjk->bik", adj[None] * sym, fea)   # (B, C, HW)
    out = out * para.reshape(1, c, h * w)
    return jax.nn.relu(out).reshape(b, c, h, w)


if __name__ == "__main__":
    B, C, H, W = 2, 8, 16, 16
    key = jax.random.PRNGKey(0)
    x = jax.random.normal(key, (B, C, H, W), dtype=jnp.float32)

    # The PyTorch module re-creates ones-initialized adj / para on every forward.
    adj = jnp.ones((C, C), dtype=jnp.float32)
    para = jnp.ones((1, C, H, W), dtype=jnp.float32)
    ref = _reference_forward(x, adj, para)

    # f32 input: native f32 HBM traffic end to end (tolerance covers MXU f32 passes).
    out = jax.block_until_ready(gcn_channel_forward(x, adj))
    assert out.shape == (B, C, H, W) and out.dtype == x.dtype
    assert jnp.allclose(out, ref, rtol=1e-2, atol=1e-2), "f32 mismatch vs reference"

    # Non-128-multiple spatial size (7x7 -> HW=49) exercises the lane-padding path.
    x2 = jax.random.normal(jax.random.PRNGKey(1), (2, 8, 7, 7), dtype=jnp.float32)
    ref2 = _reference_forward(x2, jnp.ones((8, 8), jnp.float32),
                              jnp.ones((1, 8, 7, 7), jnp.float32))
    out2 = jax.block_until_ready(gcn_channel_forward(x2))
    assert jnp.allclose(out2, ref2, rtol=1e-2, atol=1e-2), "padded-HW mismatch vs reference"

    # bf16 input: kernel keeps bf16 HBM traffic and a bf16 output (looser tolerance).
    x3 = x.astype(jnp.bfloat16)
    ref3 = _reference_forward(x3, adj, para)
    out3 = jax.block_until_ready(gcn_channel_forward(x3))
    assert out3.dtype == jnp.bfloat16
    assert jnp.allclose(out3.astype(jnp.float32), ref3, rtol=5e-2, atol=5e-2), \
        "bf16 mismatch vs reference"

    print("KERNEL_OK")
</pallas_src>

<mosaic_0001>
module attributes {stable_mosaic.version = 11 : i64} {
  func.func @_gcn_channel_kernel(%arg0: i32, %arg1: i32, %arg2: memref<1x8x8xf32, #tpu.memory_space<vmem>>, %arg3: memref<1x8x256xf32, #tpu.memory_space<vmem>>, %arg4: memref<1x8x256xf32, #tpu.memory_space<vmem>>) attributes {dimension_semantics = [#tpu.dimension_semantics<parallel>, #tpu.dimension_semantics<parallel>], iteration_bounds = array<i64: 2, 1>, scalar_prefetch = 0 : i64, scratch_operands = 0 : i64, tpu.core_type = #tpu.core_type<tc>, window_params = [{transform_indices = @transform_0, window_bounds = array<i64: 1, 8, 8>}, {transform_indices = @transform_1, window_bounds = array<i64: 1, 8, 256>}, {transform_indices = @transform_2, window_bounds = array<i64: 1, 8, 256>}]} {
    %c0 = arith.constant 0 : index
    %c0_0 = arith.constant 0 : index
    %c0_1 = arith.constant 0 : index
    %0 = vector.load %arg2[%c0, %c0_0, %c0_1] : memref<1x8x8xf32, #tpu.memory_space<vmem>>, vector<1x8x8xf32>
    %1 = vector.shape_cast %0 : vector<1x8x8xf32> to vector<8x8xf32>
    %c0_2 = arith.constant 0 : index
    %c0_3 = arith.constant 0 : index
    %c0_4 = arith.constant 0 : index
    %2 = vector.load %arg3[%c0_2, %c0_3, %c0_4] : memref<1x8x256xf32, #tpu.memory_space<vmem>>, vector<1x8x256xf32>
    %3 = vector.shape_cast %2 : vector<1x8x256xf32> to vector<8x256xf32>
    %cst = arith.constant dense<0.000000e+00> : vector<8x256xf32>
    %4 = tpu.matmul %1, %3, %cst {dimension_numbers = #tpu.dot_dimension_numbers<[1], [0], [0], [1], [0, 0, 1, 1], [], []>} : vector<8x8xf32>, vector<8x256xf32>, vector<8x256xf32> -> vector<8x256xf32>
    %cst_5 = arith.constant 0.000000e+00 : f32
    %5 = vector.broadcast %cst_5 : f32 to vector<8x256xf32>
    %6 = arith.maximumf %4, %5 : vector<8x256xf32>
    %c0_6 = arith.constant 0 : index
    %c0_7 = arith.constant 0 : index
    %c0_8 = arith.constant 0 : index
    %7 = vector.load %arg4[%c0_6, %c0_7, %c0_8] : memref<1x8x256xf32, #tpu.memory_space<vmem>>, vector<1x8x256xf32>
    %8 = vector.shape_cast %7 : vector<1x8x256xf32> to vector<8x256xf32>
    %9 = vector.shape_cast %6 : vector<8x256xf32> to vector<1x8x256xf32>
    tpu.vector_store %arg4[%c0_6, %c0_7, %c0_8], %9 {strides = array<i32>} : memref<1x8x256xf32, #tpu.memory_space<vmem>>, vector<1x8x256xf32>,
    return
  }
  func.func @transform_0(%arg0: i32, %arg1: i32) -> (i32, i32, i32) {
    %c0_i32 = arith.constant 0 : i32
    %c0_i32_0 = arith.constant 0 : i32
    %c0_i32_1 = arith.constant 0 : i32
    return %arg0, %c0_i32, %c0_i32_0 : i32, i32, i32
  }
  func.func @transform_1(%arg0: i32, %arg1: i32) -> (i32, i32, i32) {
    %c0_i32 = arith.constant 0 : i32
    %c0_i32_0 = arith.constant 0 : i32
    return %arg0, %c0_i32, %arg1 : i32, i32, i32
  }
  func.func @transform_2(%arg0: i32, %arg1: i32) -> (i32, i32, i32) {
    %c0_i32 = arith.constant 0 : i32
    %c0_i32_0 = arith.constant 0 : i32
    return %arg0, %c0_i32, %arg1 : i32, i32, i32
  }
}

</mosaic_0001>

<bundles_post_ra>
// kernel: tpu_custom_call.1
= control target key start
LH: loop header
LB: loop body
LE: loop exit
PB: predicated region body
PF: predicated region fallthrough
CT: control target
= control target key end

     0   :  { %7 = vsyncpa [#allocation3], 0  ;;  %s837_s0 = inlined_call_operand.hbm [shape: f32[2,8,8], index: 0, kind: input, shape index: {}]   ;;  %s838_s1 = inlined_call_operand.hbm [shape: f32[2,8,256], index: 1, kind: input, shape index: {}]   ;;  %s839_s2 = inlined_call_operand.hbm [shape: f32[2,8,256], index: 2, kind: output, shape index: {}]  }
   0x1   :  { %9 = vsyncpa [#allocation3 + $0x1], 0 }
   0x2   :  { %10 = vsyncpa [#allocation6], 0 }
   0x3   :  { %12 = vsyncpa [#allocation6 + $0x1], 0 }
   0x4   :  { %13 = vsyncpa [#allocation4], 0 }
   0x5   :  { %15 = vsyncpa [#allocation4 + $0x1], 0  ;;  %s673_s9 = smov 0   ;;  %s675_s10 = smov 0  }
   0x6   :  { %s677_s11 = smov 0   ;;  %s679_s12 = smov 0  }
   0x7   :  { %s681_s13 = smov 0   ;;  %s683_s14 = smov 0  }
   0x8 LB: > { %s423_s15 = sadd.s32 4294967295, %s652_s14   ;;  %s424_s16 = sadd.s32 4294967294, %s652_s14   ;;  %s652_s14 = sphi %s683_s14, %s21_s14   ;;  %s648_s13 = sphi %s681_s13, %s851_s13   ;;  %s644_s12 = sphi %s679_s12, %s850_s12   ;;  %s640_s11 = sphi %s677_s11, %s849_s11   ;;  %s636_s10 = sphi %s675_s10, %s848_s10   ;;  %s632_s9 = sphi %s673_s9, %s847_s9  }
   0x9   : > { %s33_s17 = sadd.s32 1, %s648_s13  ;;  %s40_s18 = sadd.s32 1, %s640_s11 }
   0xa   : > { %p35_p0 = scmp.ge.s32.totalorder %s33_s17, 2  ;;  %p47_p1 = scmp.ne.s32.totalorder %s640_s11, %s636_s10 }
   0xb   : > { %p48_p2 = scmp.eq.s32.totalorder %s652_s14, 0  ;;  %p53_p3 = scmp.ne.s32.totalorder %s636_s10, %s632_s9 }
   0xc   : > { %s853_s17 = smov (%p35_p0, %s33_s17), 0  ;;  %p54_p5 = scmp.eq.s32.totalorder %s423_s15, 0 }
   0xd   : > { %p714_p4 = por %p48_p2, %p47_p1  ;;  %s37_s20 = ssub.s32 %s648_s13, %s853_s17 }
   0xe   : > { %p107_p6 = scmp.eq.s32.totalorder %s423_s15, 1  ;;  %p38_p7 = scmp.eq.s32.totalorder %s37_s20, 0 }
   0xf   : > { %p720_p8 = por %p54_p5, %p53_p3  ;;  %p113_p10 = scmp.eq.s32.totalorder %s424_s16, 1 }
  0x10   : > { %p724_p9 = por %p107_p6, %p47_p1  ;;  %p461_p13 = scmp.lt.s32.totalorder %s652_s14, 2 }
  0x11   : > { %s729_s23 = scalar_select %p38_p7, %s640_s11, %s40_s18  }
  0x12   : > { %p731_p11 = por %p113_p10, %p53_p3  ;;  %s738_s25 = sand.u32 1, %s640_s11  }
  0x13   : > { %s427_s26 = sshll.u32 %s738_s25, 3  ;;  %s428_s27 = sshll.u32 %s648_s13, 7 }
  0x14   : > { %s142_s30 = scalar_lea.hbm %s837_s0, %s428_s27  ;;  %s137_s3 = scalar_lea.vmem [#allocation2], %s427_s26 }
  0x15   : > { %s144_s4 = sshll.u32 %s137_s3, 4  ;;  %p747_p0 = pnand %p461_p13, %p714_p4  ;;  %s145_s4 = int_to_ptr.vmem [resolvable:$true] %s144_s4 }
  0x16   : > { %p432_p1 = scmp.ge.s32.totalorder %s652_s14, 1  ;;  %p170_p2 = scmp.lt.s32.totalorder %s652_s14, 3 }
  0x17   : > { %s134_s6 = scalar_lea.sflag [#allocation3], %s738_s25  ;;  %p514_p3 = pneg %p747_p0 }
  0x18   : > { %s525_s7 = scalar_lea.vmem %s145_s4, 128  ;;  %s654_s8 = smov [#allocation2]  }
  0x19   : > { %p526_p5 = scmp.ne.s32.totalorder %s145_s4, %s525_s7  ;;  %s530_s15 = sshll.u32 %s654_s8, 4  ;;  %s531_s15 = int_to_ptr.vmem [resolvable:$false] %s530_s15 }
  0x1a   : > { %s532_s16 = scalar_lea.vmem %s531_s15, 256  ;;  %p533_p4 = scmp.lt.s32.totalorder %s145_s4, %s531_s15 }
  0x1b   : > { %p528_p6 = pnand %p526_p5, %p514_p3  ;;  %p534_p10 = scmp.lt.s32.totalorder %s532_s16, %s525_s7 }
  0x1d   : > { %p529_p7 = pneg %p528_p6  ;;  %p535_p13 = por %p534_p10, %p533_p4 }
  0x1f   : > { %p536_p12 = pnand %p535_p13, %p529_p7 }
  0x21   : > { %539 = shalt.err (!%p536_p12)
}
  0x22   : > { %453 = dma.hbm_to_vmem [thread:$0]  (!%p747_p0), %s142_s30, 128, %s145_s4, %s134_s6  }
  0x23   : > { %p765_p5 = pnand %p432_p1, %p170_p2  ;;  %s429_s19 = sshll.u32 %s738_s25, 4 }
  0x24   : > { %s442_s20 = sshll.u32 %s648_s13, 8  ;;  %s155_s29 = scalar_lea.vmem [#allocation5], %s429_s19 }
  0x25   : > { %s163_s28 = scalar_lea.hbm %s838_s1, %s442_s20  ;;  %s165_s3 = sshll.u32 %s155_s29, 4  ;;  %s166_s3 = int_to_ptr.vmem [resolvable:$true] %s165_s3 }
  0x26   : > { %s152_s7 = scalar_lea.sflag [#allocation6], %s738_s25  ;;  %s553_s8 = scalar_lea.vmem %s166_s3, 256 }
  0x27   : > { %p554_p12 = scmp.ne.s32.totalorder %s166_s3, %s553_s8  ;;  %s655_s30 = smov [#allocation5]  }
  0x28   : > { %s558_s4 = sshll.u32 %s655_s30, 4  ;;  %s559_s4 = int_to_ptr.vmem [resolvable:$false] %s558_s4 }
  0x29   : > { %p556_p6 = pnand %p554_p12, %p514_p3  ;;  %s560_s6 = scalar_lea.vmem %s559_s4, 512 }
  0x2a   : > { %p561_p1 = scmp.lt.s32.totalorder %s166_s3, %s559_s4  ;;  %p562_p2 = scmp.lt.s32.totalorder %s560_s6, %s553_s8 }
  0x2b   : > { %p557_p7 = pneg %p556_p6 }
  0x2c   : > { %p563_p4 = por %p562_p2, %p561_p1 }
  0x2e   : > { %p564_p10 = pnand %p563_p4, %p557_p7 }
  0x30   : > { %567 = shalt.err (!%p564_p10)
}
  0x31   : > { %456 = dma.hbm_to_vmem [thread:$0]  (!%p747_p0), %s163_s28, 256, %s166_s3, %s152_s7  }
  0x32   : > { %174 = sbr.rel (%p765_p5) target bundleno = 272 (0x110), region = 28  ;;  %s783_s25 = sand.u32 (!%p765_p5), 1, %s636_s10  }
  0x33   : > { %s433_s15 = sshll.u32 (!%p765_p5), %s783_s25, 3  ;;  %s177_s16 = scalar_lea.sflag (!%p765_p5), [#allocation3], %s783_s25 }
  0x34   : > { %s180_s19 = scalar_lea.vmem (!%p765_p5), [#allocation2], %s433_s15 }
  0x37   : > { %619 = dma.done.wait (%p720_p8), %s177_s16, 128  }
  0x38   : > { %621 = vsyncadd (%p720_p8), %s177_s16, 4294967168  ;;  %s434_s5 = sshll.u32 %s783_s25, 4  ;;  %s186_s18 = scalar_lea.sflag [#allocation6], %s783_s25 }
  0x39   : > { %s189_s20 = scalar_lea.vmem [#allocation5], %s434_s5 }
  0x3a   : > { %623 = dma.done.wait (%p720_p8), %s186_s18, 256  }
  0x3b   : > { %625 = vsyncadd (%p720_p8), %s186_s18, 4294967040  ;;  %v656_v0 = vmov 0.0   ;;  %v219_v1 = vld [vmem:[%s189_s20 + $0x8] sm:$0xff]  ;;  %v218_v2 = vld [vmem:[%s189_s20] sm:$0xff]  ;;  %vm220_vm0 = vcmask 64512   ;;  %s443_s26 = sshll.u32 %s644_s12, 8 }
  0x3c   : > { %288 = vmatprep.mubr.f32.mxu0 %v656_v0  ;;  %v217_v3 = vld [vmem:[%s180_s19] sm:$0xff]  ;;  %254 = vmatprep.subr.mxu0 %v219_v1  ;;  %s214_s27 = scalar_lea.vmem [#allocation7], %s434_s5  ;;  %s314_s3 = scalar_lea.hbm %s839_s2, %s443_s26 }
  0x3d   : > { %255 = vmatpush1.msra.mxu0 %v218_v2  ;;  %s316_s28 = sshll.u32 %s214_s27, 4  ;;  %s300_s7 = scalar_lea.sflag [#allocation4], %s783_s25  ;;  %s317_s28 = int_to_ptr.vmem [resolvable:$true] %s316_s28 }
  0x3e   : > { %436 = vmatmul.mubr.msk.f32.vlgmr.msra.gmra.mxu0 %vm220_vm0, %v217_v3  ;;  %s568_s8 = scalar_lea.vmem %s317_s28, 256  ;;  %s657_s30 = smov [#allocation7]  }
  0x3f   : > { %p569_p8 = scmp.ne.s32.totalorder %s317_s28, %s568_s8  ;;  %s572_s12 = sshll.u32 %s657_s30, 4  ;;  %s573_s12 = int_to_ptr.vmem [resolvable:$false] %s572_s12 }
  0x40   : > { %s574_s4 = scalar_lea.vmem %s573_s12, 512  ;;  %p575_p13 = scmp.lt.s32.totalorder %s317_s28, %s573_s12 }
  0x41   : > { %p570_p0 = pnand %p569_p8, %p724_p9  ;;  %p576_p5 = scmp.lt.s32.totalorder %s574_s4, %s568_s8 }
  0x43   : > { %p571_p3 = pneg %p570_p0  ;;  %p577_p12 = por %p576_p5, %p575_p13 }
  0x45   : > { %p578_p6 = pnand %p577_p12, %p571_p3 }
  0xfe   : > { %v290_v4 = vpop.f32.mrf.mxu0 }
  0xff   : > { %v295_v5 = vmax.f32 %v290_v4, 0.0 }
 0x100   : > { %v292_v6 = vpop.f32.mrf.mxu0 }
 0x101   : > { %297 = vst [vmem:[%s214_s27] sm:$0xff] %v295_v5  ;;  %v296_v7 = vmax.f32 %v292_v6, 0.0 }
 0x103   : > { %298 = vst [vmem:[%s214_s27 + $0x8] sm:$0xff] %v296_v7 }
 0x104   : > { %581 = shalt.err (!%p578_p6)
}
 0x105   : > { %s582_s6 = scalar_lea.hbm %s314_s3, 256  ;;  %s586_s16 = scalar_lea.hbm %s839_s2, 512 }
 0x106   : > { %p583_p7 = scmp.ne.s32.totalorder %s314_s3, %s582_s6  ;;  %p587_p4 = scmp.lt.s32.totalorder %s314_s3, %s839_s2 }
 0x107   : > { %p588_p10 = scmp.lt.s32.totalorder %s586_s16, %s582_s6 }
 0x108   : > { %p584_p1 = pnand %p583_p7, %p724_p9 }
 0x109   : > { %p589_p8 = por %p588_p10, %p587_p4 }
 0x10a   : > { %p585_p2 = pneg %p584_p1 }
 0x10c   : > { %p590_p0 = pnand %p589_p8, %p585_p2 }
 0x10e   : > { %593 = shalt.err (!%p590_p0)
}
 0x10f   : > { %448 = dma.vmem_to_hbm [thread:$0]  (%p724_p9), %s317_s28, 256, %s314_s3, %s300_s7  }
 0x110 PF: > { %s328_s18 = sand.u32 1, %s632_s9   ;;  %p846_p3 = scmp.ge.s32.totalorder %s652_s14, 2 }
 0x111   : > { %s329_s20 = scalar_lea.sflag [#allocation4], %s328_s18 }
 0x112   : > { %p458_p13 = pnand %p846_p3, %p731_p11 }
 0x114   : > { %p459_p5 = pneg %p458_p13 }
 0x116   : > { %627 = dma.done.wait (%p459_p5), %s329_s20, 256  }
 0x117   : > { %629 = vsyncadd (%p459_p5), %s329_s20, 4294967040  ;;  %s21_s14 = sadd.s32 1, %s652_s14   ;;  %s847_s9 = smov %s636_s10 }
 0x118   : > { %p18_p12 = scmp.ge.s32.totalorder %s21_s14, 4   ;;  %s848_s10 = smov %s640_s11 }
 0x119   : > { %s849_s11 = smov %s729_s23  ;;  %s850_s12 = smov %s648_s13 }
 0x11a   : > { %s851_s13 = smov %s853_s17  ;;  %20 = sbr.rel (!%p18_p12) target bundleno = 8 (0x8), region = 86 }
 0x11f   :  { %334 = vsyncpa [#allocation3], 1 }
 0x120   :  { %336 = vsyncpa [#allocation3 + $0x1], 1 }
 0x121   :  { %337 = vsyncpa [#allocation6], 1 }
 0x122   :  { %339 = vsyncpa [#allocation6 + $0x1], 1 }
 0x123   :  { %340 = vsyncpa [#allocation4], 1 }
 0x124   :  { %342 = vsyncpa [#allocation4 + $0x1], 1 }

</bundles_post_ra>
